<compile_context>
chip_gen: v6e
topology: v6e:2x2x1
jax: 0.10.0
libtpu: 0.0.40
codegen_flags: <defaults>
</compile_context>

<pallas_src>
import functools

import jax
import jax.numpy as jnp
from jax import lax
from jax.experimental import pallas as pl
from jax.experimental.pallas import tpu as pltpu

K = 4
STRIDE = 2
PAD = 1
BN_EPS = 1e-5
NEG_SLOPE = 0.2
_VMEM_CAP = 48 * 1024 * 1024   # headroom below v7x 64 MiB physical VMEM


def _round_up(x: int, m: int) -> int:
    return (x + m - 1) // m * m


def _floor8(x: int) -> int:
    return max(8, (x // 8) * 8)


# ----------------------------- kernels ------------------------------------- #

def _conv_stats_kernel(patches_ref, w_ref, conv_ref, stats_ref, *,
                       tiles_per_chunk: int, tm: int, m_total: int):
    """Pass 1 (BN path): conv matmul per M-tile. Writes the conv tile once
    (reused by the elementwise pass 2) and accumulates this chunk's per-channel
    sum / sum-of-squares into a resident (1, 2, OCp) block."""
    c = pl.program_id(0)   # parallel chunk axis (megacore)
    i = pl.program_id(1)   # arbitrary (reduction) axis within the chunk

    @pl.when(i == 0)
    def _init():
        stats_ref[...] = jnp.zeros_like(stats_ref)

    conv = jnp.dot(patches_ref[...], w_ref[...],
                   preferred_element_type=jnp.float32)
    conv_ref[...] = conv.astype(conv_ref.dtype)

    # Mask rows past the true M so the partial last tile (unspecified pad data)
    # contributes exactly zero to the statistics.
    tile = c * tiles_per_chunk + i
    rows = tile * tm + lax.broadcasted_iota(jnp.int32, (tm, 1), 0)
    convm = jnp.where(rows < m_total, conv, 0.0)
    part = jnp.concatenate(
        [jnp.sum(convm, axis=0, keepdims=True),
         jnp.sum(convm * convm, axis=0, keepdims=True)],
        axis=0).reshape(stats_ref.shape)
    stats_ref[...] += part


def _bn_lrelu_kernel(conv_ref, ss_ref, out_ref):
    """Pass 2: purely elementwise — fused BN (one FMA) + LeakyReLU(0.2)."""
    y = conv_ref[...].astype(jnp.float32) * ss_ref[0:1, :] + ss_ref[1:2, :]
    out_ref[...] = jnp.where(y > 0, y, NEG_SLOPE * y).astype(out_ref.dtype)


def _conv_lrelu_kernel(patches_ref, w_ref, out_ref):
    """batch_norm=False path: conv + LeakyReLU in a single fused pass."""
    conv = jnp.dot(patches_ref[...], w_ref[...],
                   preferred_element_type=jnp.float32)
    out_ref[...] = jnp.where(conv > 0, conv,
                             NEG_SLOPE * conv).astype(out_ref.dtype)


# ----------------------------- wrapper ------------------------------------- #

def _im2col(x_nchw):
    """x: (N, C, H, W) -> patches (N*OH*OW, C*K*K), feature order c-major then
    (kh*K+kw) — matches weight.reshape(OC, C*K*K)."""
    N, C, H, W = x_nchw.shape
    OH = (H + 2 * PAD - K) // STRIDE + 1
    OW = (W + 2 * PAD - K) // STRIDE + 1
    xp = jnp.pad(x_nchw, ((0, 0), (0, 0), (PAD, PAD), (PAD, PAD)))
    cols = []
    for kh in range(K):
        for kw in range(K):
            cols.append(xp[:, :,
                           kh:kh + OH * STRIDE:STRIDE,
                           kw:kw + OW * STRIDE:STRIDE])        # (N, C, OH, OW)
    win = jnp.stack(cols, axis=-1)                             # (N, C, OH, OW, KK)
    patches = win.transpose(0, 2, 3, 1, 4).reshape(N * OH * OW, C * K * K)
    return patches, (N, OH, OW)


def conv_layer(x_nchw, weight, gamma=None, beta=None, *, batch_norm=True,
               tm=1024, tm2=4096, compute_dtype=jnp.bfloat16,
               conv_dtype=jnp.bfloat16, out_dtype=None, return_nhwc=False):
    """DCGAN ConvLayer forward.

    x: (N, C, H, W), weight: (OC, C, 4, 4) (Conv2d k=4, s=2, p=1, bias=False)
    -> BatchNorm2d (training mode, batch stats) -> LeakyReLU(0.2).
    conv_dtype is the dtype of the stored conv intermediate on the BN path
    (bf16 default halves pass-2 HBM traffic; use f32 for bit-tight BN input).
    """
    N, C, H, W = x_nchw.shape
    OC = weight.shape[0]
    out_dtype = jnp.dtype(out_dtype) if out_dtype is not None else x_nchw.dtype

    # Channel padding BEFORE im2col keeps CKK lane-dense (multiple of 128)
    # without copying the 4x-expanded patch matrix a second time.
    Cp = _round_up(C, 8)
    xq = x_nchw.astype(compute_dtype)
    if Cp != C:
        xq = jnp.pad(xq, ((0, 0), (0, Cp - C), (0, 0), (0, 0)))
    # TODO(synk): fuse im2col into the kernel (overlapping row-band DMA).
    patches, (N, OH, OW) = _im2col(xq)
    M, CKKp = patches.shape                                    # CKKp = Cp*16

    OCp = _round_up(OC, 128)
    wq = weight.astype(compute_dtype)
    if Cp != C:
        wq = jnp.pad(wq, ((0, 0), (0, Cp - C), (0, 0), (0, 0)))
    # TODO(synk): pad/transpose the weight once at parameter-prep time.
    w_p = jnp.pad(wq.reshape(OC, Cp * K * K).T, ((0, 0), (0, OCp - OC)))

    cd = jnp.dtype(compute_dtype).itemsize
    cvb = jnp.dtype(conv_dtype).itemsize
    ob = jnp.dtype(out_dtype).itemsize

    # --- matmul-pass tiling (pass 1 / no-BN pass), VMEM-guarded ---
    TM = min(_floor8(int(tm)), _floor8(M))

    def _pass1_vmem(t):
        return (2 * t * CKKp * cd              # patch tiles (double-buffered)
                + 2 * CKKp * OCp * cd          # resident weight (2 bufs default)
                + 2 * t * OCp * max(cvb, ob)   # conv / out tiles
                + 8 * OCp * 4 + (1 << 20))     # stats + margin

    while _pass1_vmem(TM) > _VMEM_CAP and TM > 64:
        TM = _floor8(TM // 2)
    num_tiles = -(-M // TM)
    Mp = num_tiles * TM
    vmem1 = int(min(max(_pass1_vmem(TM) * 3 // 2, 32 * 1024 * 1024), _VMEM_CAP))

    if batch_norm:
        # Megacore: split the M tiles into 2 chunks on the outer "parallel"
        # axis when the tile count splits evenly (odd counts fall back to a
        # single chunk; tune `tm` so num_tiles is even if that matters).
        NCHUNK = 2 if (num_tiles >= 2 and num_tiles % 2 == 0) else 1
        TPC = num_tiles // NCHUNK

        conv_p, part = pl.pallas_call(
            functools.partial(_conv_stats_kernel,
                              tiles_per_chunk=TPC, tm=TM, m_total=M),
            out_shape=(jax.ShapeDtypeStruct((Mp, OCp), conv_dtype),
                       jax.ShapeDtypeStruct((NCHUNK, 2, OCp), jnp.float32)),
            grid=(NCHUNK, TPC),
            in_specs=[pl.BlockSpec((TM, CKKp), lambda c, i: (c * TPC + i, 0)),
                      pl.BlockSpec((CKKp, OCp), lambda c, i: (0, 0))],
            out_specs=(pl.BlockSpec((TM, OCp), lambda c, i: (c * TPC + i, 0)),
                       pl.BlockSpec((1, 2, OCp), lambda c, i: (c, 0, 0))),
            compiler_params=pltpu.CompilerParams(
                dimension_semantics=("parallel", "arbitrary"),
                vmem_limit_bytes=vmem1),
        )(patches, w_p)

        # Tiny O(OC) finalize in plain JAX: combine per-chunk partials into the
        # fused BN (scale, shift) pair.
        tot = jnp.sum(part, axis=0)                            # (2, OCp)
        mean = tot[0] / float(M)
        # TODO(synk): E[x^2]-E[x]^2 can cancel for very large M when
        # |mean| >> std; switch to a shifted/compensated sum if that matters.
        var = jnp.maximum(tot[1] / float(M) - mean * mean, 0.0)
        inv = lax.rsqrt(var + BN_EPS)
        gamma_p = jnp.pad(jnp.asarray(gamma, jnp.float32).reshape(OC),
                          (0, OCp - OC))
        beta_p = jnp.pad(jnp.asarray(beta, jnp.float32).reshape(OC),
                         (0, OCp - OC))
        scale = gamma_p * inv
        shift = beta_p - mean * scale
        ss = jnp.stack([scale, shift], axis=0)                 # (2, OCp) f32

        # Pass 2: elementwise only — larger independent tile, both cores.
        TM2 = min(_floor8(int(tm2)), Mp)

        def _pass2_vmem(t):
            return 2 * t * OCp * (cvb + ob) + 8 * OCp * 4 + (1 << 20)

        while _pass2_vmem(TM2) > _VMEM_CAP and TM2 > 64:
            TM2 = _floor8(TM2 // 2)
        n2 = -(-Mp // TM2)
        vmem2 = int(min(max(_pass2_vmem(TM2) * 3 // 2, 32 * 1024 * 1024),
                        _VMEM_CAP))

        out_p = pl.pallas_call(
            _bn_lrelu_kernel,
            out_shape=jax.ShapeDtypeStruct((Mp, OCp), out_dtype),
            grid=(n2,),
            in_specs=[pl.BlockSpec((TM2, OCp), lambda i: (i, 0)),
                      pl.BlockSpec((2, OCp), lambda i: (0, 0))],
            out_specs=pl.BlockSpec((TM2, OCp), lambda i: (i, 0)),
            compiler_params=pltpu.CompilerParams(
                dimension_semantics=("parallel",),
                vmem_limit_bytes=vmem2),
        )(conv_p, ss)
    else:
        out_p = pl.pallas_call(
            _conv_lrelu_kernel,
            out_shape=jax.ShapeDtypeStruct((Mp, OCp), out_dtype),
            grid=(num_tiles,),
            in_specs=[pl.BlockSpec((TM, CKKp), lambda i: (i, 0)),
                      pl.BlockSpec((CKKp, OCp), lambda i: (0, 0))],
            out_specs=pl.BlockSpec((TM, OCp), lambda i: (i, 0)),
            compiler_params=pltpu.CompilerParams(
                dimension_semantics=("parallel",),
                vmem_limit_bytes=vmem1),
        )(patches, w_p)

    out = out_p[:M, :OC].reshape(N, OH, OW, OC)
    if return_nhwc:
        # Cheaper hand-off when the consumer is another ConvLayer (skips the
        # NHWC->NCHW round trip through HBM).
        return out
    return out.transpose(0, 3, 1, 2)


# ----------------------------- reference & test ---------------------------- #

def _reference(x, weight, gamma, beta, batch_norm=True, conv_round_dtype=None):
    """Pure-JAX reference of the PyTorch module (training-mode BN). If
    conv_round_dtype is set, the conv value fed to the BN FMA is rounded to
    that dtype (mirrors the kernel's stored conv intermediate)."""
    conv = lax.conv_general_dilated(
        x.astype(jnp.float32), weight.astype(jnp.float32),
        window_strides=(STRIDE, STRIDE), padding=((PAD, PAD), (PAD, PAD)),
        dimension_numbers=("NCHW", "OIHW", "NCHW"))
    if batch_norm:
        mean = jnp.mean(conv, axis=(0, 2, 3), keepdims=True)
        var = jnp.mean((conv - mean) ** 2, axis=(0, 2, 3), keepdims=True)
        scale = gamma.reshape(1, -1, 1, 1) * lax.rsqrt(var + BN_EPS)
        shift = beta.reshape(1, -1, 1, 1) - mean * scale
        c = conv
        if conv_round_dtype is not None:
            c = conv.astype(conv_round_dtype).astype(jnp.float32)
        y = c * scale + shift
    else:
        y = conv
    return jnp.where(y > 0, y, NEG_SLOPE * y)


if __name__ == "__main__":
    key = jax.random.PRNGKey(0)
    k_x, k_w, k_g, k_b, k_x2 = jax.random.split(key, 5)

    N, C, H, W, OC = 2, 4, 16, 16, 8
    x = jax.random.normal(k_x, (N, C, H, W), dtype=jnp.float32)
    weight = jax.random.normal(k_w, (OC, C, K, K), dtype=jnp.float32) * 0.1
    gamma = 1.0 + 0.2 * jax.random.normal(k_g, (OC,), dtype=jnp.float32)
    beta = 0.1 * jax.random.normal(k_b, (OC,), dtype=jnp.float32)

    # References see the same bf16-quantized inputs the kernel sees.
    xq = x.astype(jnp.bfloat16).astype(jnp.float32)
    wq = weight.astype(jnp.bfloat16).astype(jnp.float32)

    # 1) BN path, f32 conv intermediate (tight tolerance vs. exact reference).
    y1 = jax.block_until_ready(conv_layer(x, weight, gamma, beta,
                                          batch_norm=True,
                                          conv_dtype=jnp.float32))
    r1 = _reference(xq, wq, gamma, beta, batch_norm=True)
    assert y1.shape == (N, OC, H // 2, W // 2), y1.shape
    assert jnp.allclose(y1, r1, atol=3e-3, rtol=3e-3), \
        float(jnp.max(jnp.abs(y1 - r1)))

    # 2) BN path, default bf16 conv intermediate (reference mirrors rounding).
    y2 = jax.block_until_ready(conv_layer(x, weight, gamma, beta,
                                          batch_norm=True))
    r2 = _reference(xq, wq, gamma, beta, batch_norm=True,
                    conv_round_dtype=jnp.bfloat16)
    assert jnp.allclose(y2, r2, atol=1e-2, rtol=1e-2), \
        float(jnp.max(jnp.abs(y2 - r2)))

    # 3) batch_norm=False path (single fused conv + LeakyReLU pass).
    y3 = jax.block_until_ready(conv_layer(x, weight, batch_norm=False))
    r3 = _reference(xq, wq, None, None, batch_norm=False)
    assert y3.shape == (N, OC, H // 2, W // 2), y3.shape
    assert jnp.allclose(y3, r3, atol=3e-3, rtol=3e-3), \
        float(jnp.max(jnp.abs(y3 - r3)))

    # 4) Multi-tile path: grid > 1, M % TM != 0 (remainder masking), and the
    #    2-chunk "parallel" stats axis (M = 2*9*9 = 162, TM = 48 -> 4 tiles).
    x2 = jax.random.normal(k_x2, (2, 4, 18, 18), dtype=jnp.float32)
    x2q = x2.astype(jnp.bfloat16).astype(jnp.float32)
    y4 = jax.block_until_ready(conv_layer(x2, weight, gamma, beta,
                                          batch_norm=True, tm=48,
                                          conv_dtype=jnp.float32))
    r4 = _reference(x2q, wq, gamma, beta, batch_norm=True)
    assert y4.shape == (2, OC, 9, 9), y4.shape
    assert jnp.allclose(y4, r4, atol=3e-3, rtol=3e-3), \
        float(jnp.max(jnp.abs(y4 - r4)))

    print("KERNEL_OK")
</pallas_src>

<mosaic_0001>
module attributes {stable_mosaic.version = 11 : i64} {
  func.func @_conv_stats_kernel(%arg0: i32, %arg1: i32, %arg2: memref<128x128xbf16, #tpu.memory_space<vmem>>, %arg3: memref<128x128xbf16, #tpu.memory_space<vmem>>, %arg4: memref<128x128xf32, #tpu.memory_space<vmem>>, %arg5: memref<1x2x128xf32, #tpu.memory_space<vmem>>) attributes {dimension_semantics = [#tpu.dimension_semantics<parallel>, #tpu.dimension_semantics<arbitrary>], iteration_bounds = array<i64: 1, 1>, scalar_prefetch = 0 : i64, scratch_operands = 0 : i64, tpu.core_type = #tpu.core_type<tc>, window_params = [{transform_indices = @transform_0, window_bounds = array<i64: 128, 128>}, {pipeline_mode = #tpu.pipeline_mode<synchronous>, transform_indices = @transform_1, window_bounds = array<i64: 128, 128>}, {transform_indices = @transform_2, window_bounds = array<i64: 128, 128>}, {transform_indices = @transform_3, window_bounds = array<i64: 1, 2, 128>}]} {
    %c0_i32 = arith.constant 0 : i32
    %0 = arith.cmpi eq, %arg1, %c0_i32 : i32
    %1 = arith.extui %0 : i1 to i32
    %c0_i32_0 = arith.constant 0 : i32
    %2 = arith.cmpi ne, %1, %c0_i32_0 : i32
    scf.if %2 {
      %cst_16 = arith.constant 0.000000e+00 : f32
      %29 = vector.broadcast %cst_16 : f32 to vector<1x2x128xf32>
      %c0_17 = arith.constant 0 : index
      %c0_18 = arith.constant 0 : index
      %c0_19 = arith.constant 0 : index
      %30 = vector.load %arg5[%c0_17, %c0_18, %c0_19] : memref<1x2x128xf32, #tpu.memory_space<vmem>>, vector<1x2x128xf32>
      tpu.vector_store %arg5[%c0_17, %c0_18, %c0_19], %29 {strides = array<i32>} : memref<1x2x128xf32, #tpu.memory_space<vmem>>, vector<1x2x128xf32>,
    } else {
    }
    %c0 = arith.constant 0 : index
    %c0_1 = arith.constant 0 : index
    %3 = vector.load %arg2[%c0, %c0_1] : memref<128x128xbf16, #tpu.memory_space<vmem>>, vector<128x128xbf16>
    %c0_2 = arith.constant 0 : index
    %c0_3 = arith.constant 0 : index
    %4 = vector.load %arg3[%c0_2, %c0_3] : memref<128x128xbf16, #tpu.memory_space<vmem>>, vector<128x128xbf16>
    %cst = arith.constant dense<0.000000e+00> : vector<128x128xf32>
    %5 = tpu.matmul %3, %4, %cst {dimension_numbers = #tpu.dot_dimension_numbers<[1], [0], [0], [1], [0, 0, 1, 1], [], []>} : vector<128x128xbf16>, vector<128x128xbf16>, vector<128x128xf32> -> vector<128x128xf32>
    %c0_4 = arith.constant 0 : index
    %c0_5 = arith.constant 0 : index
    %6 = vector.load %arg4[%c0_4, %c0_5] : memref<128x128xf32, #tpu.memory_space<vmem>>, vector<128x128xf32>
    tpu.vector_store %arg4[%c0_4, %c0_5], %5 {strides = array<i32>} : memref<128x128xf32, #tpu.memory_space<vmem>>, vector<128x128xf32>,
    %c1_i32 = arith.constant 1 : i32
    %7 = arith.muli %arg0, %c1_i32 : i32
    %8 = arith.addi %7, %arg1 : i32
    %c128_i32 = arith.constant 128 : i32
    %9 = arith.muli %8, %c128_i32 : i32
    %10 = tpu.iota {dimensions = array<i32: 0>} : vector<128x1xi32>
    %11 = vector.broadcast %9 : i32 to vector<128x1xi32>
    %12 = arith.addi %11, %10 : vector<128x1xi32>
    %c128_i32_6 = arith.constant 128 : i32
    %13 = vector.broadcast %c128_i32_6 : i32 to vector<128x1xi32>
    %14 = arith.cmpi slt, %12, %13 : vector<128x1xi32>
    %cst_7 = arith.constant 0.000000e+00 : f32
    %15 = vector.shape_cast %14 : vector<128x1xi1> to vector<128x1xi1>
    %16 = vector.broadcast %15 : vector<128x1xi1> to vector<128x128xi1>
    %17 = vector.broadcast %cst_7 : f32 to vector<128x128xf32>
    %18 = arith.select %16, %5, %17 : vector<128x128xi1>, vector<128x128xf32>
    %cst_8 = arith.constant dense<0.000000e+00> : vector<128xf32>
    %19 = vector.multi_reduction <add>, %18, %cst_8 [0] : vector<128x128xf32> to vector<128xf32>
    %20 = vector.shape_cast %19 : vector<128xf32> to vector<1x128xf32>
    %21 = arith.mulf %18, %18 : vector<128x128xf32>
    %cst_9 = arith.constant dense<0.000000e+00> : vector<128xf32>
    %22 = vector.multi_reduction <add>, %21, %cst_9 [0] : vector<128x128xf32> to vector<128xf32>
    %23 = vector.shape_cast %22 : vector<128xf32> to vector<1x128xf32>
    %24 = tpu.concatenate %20, %23 in 0 : vector<1x128xf32>, vector<1x128xf32> -> vector<2x128xf32>
    %25 = vector.shape_cast %24 : vector<2x128xf32> to vector<1x2x128xf32>
    %c0_10 = arith.constant 0 : index
    %c0_11 = arith.constant 0 : index
    %c0_12 = arith.constant 0 : index
    %26 = vector.load %arg5[%c0_10, %c0_11, %c0_12] : memref<1x2x128xf32, #tpu.memory_space<vmem>>, vector<1x2x128xf32>
    %27 = arith.addf %26, %25 : vector<1x2x128xf32>
    %c0_13 = arith.constant 0 : index
    %c0_14 = arith.constant 0 : index
    %c0_15 = arith.constant 0 : index
    %28 = vector.load %arg5[%c0_13, %c0_14, %c0_15] : memref<1x2x128xf32, #tpu.memory_space<vmem>>, vector<1x2x128xf32>
    tpu.vector_store %arg5[%c0_13, %c0_14, %c0_15], %27 {strides = array<i32>} : memref<1x2x128xf32, #tpu.memory_space<vmem>>, vector<1x2x128xf32>,
    return
  }
  func.func @transform_0(%arg0: i32, %arg1: i32) -> (i32, i32) {
    %c1_i32 = arith.constant 1 : i32
    %0 = arith.muli %arg0, %c1_i32 : i32
    %1 = arith.addi %0, %arg1 : i32
    %c0_i32 = arith.constant 0 : i32
    %c0_i32_0 = arith.constant 0 : i32
    return %1, %c0_i32 : i32, i32
  }
  func.func @transform_1(%arg0: i32, %arg1: i32) -> (i32, i32) {
    %c0_i32 = arith.constant 0 : i32
    %c0_i32_0 = arith.constant 0 : i32
    %c0_i32_1 = arith.constant 0 : i32
    return %c0_i32, %c0_i32_0 : i32, i32
  }
  func.func @transform_2(%arg0: i32, %arg1: i32) -> (i32, i32) {
    %c1_i32 = arith.constant 1 : i32
    %0 = arith.muli %arg0, %c1_i32 : i32
    %1 = arith.addi %0, %arg1 : i32
    %c0_i32 = arith.constant 0 : i32
    %c0_i32_0 = arith.constant 0 : i32
    return %1, %c0_i32 : i32, i32
  }
  func.func @transform_3(%arg0: i32, %arg1: i32) -> (i32, i32, i32) {
    %c0_i32 = arith.constant 0 : i32
    %c0_i32_0 = arith.constant 0 : i32
    %c0_i32_1 = arith.constant 0 : i32
    return %arg0, %c0_i32, %c0_i32_0 : i32, i32, i32
  }
}

</mosaic_0001>

<bundles_post_ra>
// kernel: tpu_custom_call.1
= control target key start
LH: loop header
LB: loop body
LE: loop exit
PB: predicated region body
PF: predicated region fallthrough
CT: control target
= control target key end

     0   :  { %9 = vsyncpa [#allocation3], 0  ;;  %s755_s0 = inlined_call_operand.hbm [shape: bf16[128,128], index: 0, kind: input, shape index: {}]   ;;  %s756_s1 = inlined_call_operand.hbm [shape: bf16[128,128], index: 1, kind: input, shape index: {}]   ;;  %s757_s2 = inlined_call_operand.hbm [shape: f32[128,128], index: 2, kind: output, shape index: {0}]   ;;  %s758_s3 = inlined_call_operand.hbm [shape: f32[1,2,128], index: 3, kind: output, shape index: {1}]  }
   0x1   :  { %10 = vsyncpa [#allocation6], 0 }
   0x2   :  { %11 = vsyncpa [#allocation4], 0 }
   0x3   :  { %12 = vsyncpa [#allocation9], 0  ;;  %s690_s12 = smov [#allocation2]  }
   0x4   :  { %s22_s13 = sshll.u32 %s690_s12, 4  ;;  %s23_s13 = int_to_ptr.vmem [resolvable:$true] %s22_s13 }
   0x5   :  { %s610_s14 = scalar_lea.vmem %s23_s13, 1024  ;;  %p615_p1 = scmp.lt.s32.totalorder %s23_s13, %s23_s13 }
   0x6   :  { %p611_p0 = scmp.ne.s32.totalorder %s23_s13, %s610_s14  ;;  %p616_p2 = scmp.lt.s32.totalorder %s610_s14, %s610_s14 }
   0x8   :  { %p617_p3 = por %p616_p2, %p615_p1 }
   0xa   :  { %p618_p4 = pnand %p617_p3, %p611_p0 }
   0xc   :  { %621 = shalt.err (!%p618_p4)
}
   0xd   :  { %s691_s15 = smov 64   ;;  %s692_s16 = smov 4  }
   0xe   :  { %28 = dma.hbm_to_vmem [thread:$0]  %s755_s0, 1024, %s23_s13, [#allocation3], %s691_s15, %s691_s15, %s692_s16  }
   0xf   :  { %s693_s19 = smov [#allocation5]  }
  0x10   :  { %s34_s20 = sshll.u32 %s693_s19, 4  ;;  %s35_s20 = int_to_ptr.vmem [resolvable:$true] %s34_s20 }
  0x11   :  { %s630_s21 = scalar_lea.vmem %s35_s20, 1024  ;;  %p635_p6 = scmp.lt.s32.totalorder %s35_s20, %s35_s20 }
  0x12   :  { %p631_p5 = scmp.ne.s32.totalorder %s35_s20, %s630_s21  ;;  %p636_p7 = scmp.lt.s32.totalorder %s630_s21, %s630_s21 }
  0x14   :  { %p637_p8 = por %p636_p7, %p635_p6 }
  0x16   :  { %p638_p9 = pnand %p637_p8, %p631_p5 }
  0x18   :  { %641 = shalt.err (!%p638_p9)
}
  0x19   :  { %40 = dma.hbm_to_vmem [thread:$0]  %s756_s1, 1024, %s35_s20, [#allocation6], %s691_s15, %s691_s15, %s692_s16  }
  0x1a   :  { %682 = dma.done.wait [#allocation3], 1024  }
  0x1b   :  { %683 = vsyncadd [#allocation3], 4294966272 }
  0x1c   :  { %684 = dma.done.wait [#allocation6], 1024  }
  0x1d   :  { %685 = vsyncadd [#allocation6], 4294966272  ;;  %v586_v0 = vld [vmem:[#allocation5 + $0x38] sm:$0xff]   ;;  %v587_v1 = vld [vmem:[#allocation5 + $0x30] sm:$0xff]   ;;  %v694_v16 = vmov 0.0   ;;  %s695_s0 = smov [#allocation7]  }
  0x1e   :  { %529 = vmatprep.subr.bf16.mxu0 %v586_v0  ;;  %561 = vmatprep.subr.bf16.mxu1 %v586_v0  ;;  %v588_v2 = vld [vmem:[#allocation5 + $0x28] sm:$0xff]   ;;  %v589_v3 = vld [vmem:[#allocation5 + $0x20] sm:$0xff]   ;;  %v590_v5 = vld [vmem:[#allocation5 + $0x18] sm:$0xff]   ;;  %56 = vst [vmem:[#allocation8] sm:$0x3] %v694_v16  ;;  %s470_s1 = sshll.u32 %s695_s0, 4  ;;  %s471_s1 = int_to_ptr.vmem [resolvable:$true] %s470_s1 }
  0x1f   :  { %530 = vmatpush3.bf16.msra.mxu0 %v586_v0  ;;  %569 = vmatpush3.bf16.msra.mxu1 %v586_v0  ;;  %v594_v4 = vld [vmem:[#allocation2] sm:$0xff]   ;;  %v591_v7 = vld [vmem:[#allocation5 + $0x10] sm:$0xff]   ;;  %v592_v8 = vld [vmem:[#allocation5 + $0x8] sm:$0xff]   ;;  %s642_s24 = scalar_lea.vmem %s471_s1, 2048  ;;  %p647_p11 = scmp.lt.s32.totalorder %s471_s1, %s471_s1 }
  0x20   :  { %531 = vmatprep.subr.bf16.mxu0 %v587_v1  ;;  %562 = vmatprep.subr.bf16.mxu1 %v587_v1  ;;  %v598_v6 = vld [vmem:[#allocation2 + $0x20] sm:$0xff]   ;;  %v595_v10 = vld [vmem:[#allocation2 + $0x8] sm:$0xff]   ;;  %v596_v12 = vld [vmem:[#allocation2 + $0x10] sm:$0xff]   ;;  %p643_p10 = scmp.ne.s32.totalorder %s471_s1, %s642_s24  ;;  %p648_p12 = scmp.lt.s32.totalorder %s642_s24, %s642_s24 }
  0x21   :  { %545 = vmatprep.mubr.bf16.mxu0 %v594_v4  ;;  %553 = vmatprep.mubr.bf16.mxu1 %v598_v6  ;;  %v593_v9 = vld [vmem:[#allocation5] sm:$0xff]   ;;  %v599_v11 = vld [vmem:[#allocation2 + $0x28] sm:$0xff]   ;;  %v600_v13 = vld [vmem:[#allocation2 + $0x30] sm:$0xff]  }
  0x22   :  { %v597_v14 = vld [vmem:[#allocation2 + $0x18] sm:$0xff]   ;;  %p649_p13 = por %p648_p12, %p647_p11 }
  0x23   :  { %532 = vmatpush3.bf16.msra.mxu0 %v587_v1  ;;  %570 = vmatpush3.bf16.msra.mxu1 %v587_v1  ;;  %v601_v15 = vld [vmem:[#allocation2 + $0x38] sm:$0xff]  }
  0x24   :  { %533 = vmatprep.subr.bf16.mxu0 %v588_v2  ;;  %563 = vmatprep.subr.bf16.mxu1 %v588_v2  ;;  %p650_p0 = pnand %p649_p13, %p643_p10 }
  0x27   :  { %534 = vmatpush3.bf16.msra.mxu0 %v588_v2  ;;  %571 = vmatpush3.bf16.msra.mxu1 %v588_v2 }
  0x28   :  { %535 = vmatprep.subr.bf16.mxu0 %v589_v3  ;;  %564 = vmatprep.subr.bf16.mxu1 %v589_v3 }
  0x2b   :  { %536 = vmatpush3.bf16.msra.mxu0 %v589_v3  ;;  %572 = vmatpush3.bf16.msra.mxu1 %v589_v3 }
  0x2c   :  { %537 = vmatprep.subr.bf16.mxu0 %v590_v5  ;;  %565 = vmatprep.subr.bf16.mxu1 %v590_v5 }
  0x2f   :  { %538 = vmatpush3.bf16.msra.mxu0 %v590_v5  ;;  %573 = vmatpush3.bf16.msra.mxu1 %v590_v5 }
  0x30   :  { %539 = vmatprep.subr.bf16.mxu0 %v591_v7  ;;  %566 = vmatprep.subr.bf16.mxu1 %v591_v7 }
  0x33   :  { %540 = vmatpush3.bf16.msra.mxu0 %v591_v7  ;;  %574 = vmatpush3.bf16.msra.mxu1 %v591_v7 }
  0x34   :  { %541 = vmatprep.subr.bf16.mxu0 %v592_v8  ;;  %567 = vmatprep.subr.bf16.mxu1 %v592_v8 }
  0x37   :  { %542 = vmatpush3.bf16.msra.mxu0 %v592_v8  ;;  %575 = vmatpush3.bf16.msra.mxu1 %v592_v8 }
  0x38   :  { %543 = vmatprep.subr.bf16.mxu0 %v593_v9  ;;  %568 = vmatprep.subr.bf16.mxu1 %v593_v9 }
  0x3b   :  { %544 = vmatpush3.bf16.msra.mxu0 %v593_v9  ;;  %576 = vmatpush3.bf16.msra.mxu1 %v593_v9 }
  0x3e   :  { %546 = vmatmul.mubr.bf16.vlgmr.msra.gmra.mxu0 %v595_v10  ;;  %554 = vmatmul.mubr.bf16.vlgmr.msra.gmra.mxu1 %v599_v11 }
  0x3f   :  { %549 = vmatprep.mubr.bf16.mxu0 %v596_v12  ;;  %557 = vmatprep.mubr.bf16.mxu1 %v600_v13 }
  0x46   :  { %550 = vmatmul.mubr.bf16.gmra.mxu0 %v597_v14  ;;  %558 = vmatmul.mubr.bf16.gmra.mxu1 %v601_v15 }
  0xfe   :  { %v547_v17 = vpop.f32.mrf.mxu0  ;;  %v725_v18 = vpop.f32.mrf.mxu1 }
  0xff   :  { %284 = vst [vmem:[#allocation7 + $0x10] sm:$0xff] %v547_v17  ;;  %292 = vst [vmem:[#allocation7 + $0x50] sm:$0xff] %v725_v18  ;;  %v421_v30 = vmul.f32 %v547_v17, %v547_v17 }
 0x100   :  { %v219_v19 = vpop.f32.mrf.mxu0  ;;  %v728_v20 = vpop.f32.mrf.mxu1 }
 0x101   :  { %282 = vst [vmem:[#allocation7] sm:$0xff] %v219_v19  ;;  %290 = vst [vmem:[#allocation7 + $0x40] sm:$0xff] %v728_v20  ;;  %v419_v25 = vmul.f32 %v219_v19, %v219_v19 }
 0x102   :  { %v548_v21 = vpop.f32.mrf.mxu0  ;;  %v731_v22 = vpop.f32.mrf.mxu1 }
 0x103   :  { %285 = vst [vmem:[#allocation7 + $0x18] sm:$0xff] %v548_v21  ;;  %293 = vst [vmem:[#allocation7 + $0x58] sm:$0xff] %v731_v22  ;;  %v422_v35 = vmul.f32 %v548_v21, %v548_v21 }
 0x104   :  { %v222_v23 = vpop.f32.mrf.mxu0  ;;  %v254_v24 = vpop.f32.mrf.mxu1 }
 0x105   :  { %283 = vst [vmem:[#allocation7 + $0x8] sm:$0xff] %v222_v23  ;;  %v398_v26 = vadd.f32 %v222_v23, %v219_v19  ;;  %v420_v27 = vmul.f32 %v222_v23, %v222_v23  ;;  %291 = vst [vmem:[#allocation7 + $0x48] sm:$0xff] %v254_v24 }
 0x106   :  { %v551_v28 = vpop.f32.mrf.mxu0  ;;  %v734_v29 = vpop.f32.mrf.mxu1 }
 0x107   :  { %v399_v31 = vadd.f32 %v547_v17, %v398_v26  ;;  %v435_v32 = vadd.f32 %v420_v27, %v419_v25  ;;  %288 = vst [vmem:[#allocation7 + $0x30] sm:$0xff] %v551_v28  ;;  %296 = vst [vmem:[#allocation7 + $0x70] sm:$0xff] %v734_v29 }
 0x108   :  { %v235_v33 = vpop.f32.mrf.mxu0  ;;  %v267_v34 = vpop.f32.mrf.mxu1 }
 0x109   :  { %v436_v36 = vadd.f32 %v435_v32, %v421_v30  ;;  %286 = vst [vmem:[#allocation7 + $0x20] sm:$0xff] %v235_v33  ;;  %v400_v37 = vadd.f32 %v548_v21, %v399_v31  ;;  %294 = vst [vmem:[#allocation7 + $0x60] sm:$0xff] %v267_v34  ;;  %v423_v41 = vmul.f32 %v235_v33, %v235_v33 }
 0x10a   :  { %v552_v38 = vpop.f32.mrf.mxu0  ;;  %v560_v39 = vpop.f32.mrf.mxu1 }
 0x10b   :  { %v401_v40 = vadd.f32 %v400_v37, %v235_v33  ;;  %v437_v42 = vadd.f32 %v436_v36, %v422_v35  ;;  %289 = vst [vmem:[#allocation7 + $0x38] sm:$0xff] %v552_v38  ;;  %297 = vst [vmem:[#allocation7 + $0x78] sm:$0xff] %v560_v39 }
 0x10c   :  { %v238_v43 = vpop.f32.mrf.mxu0  ;;  %v270_v44 = vpop.f32.mrf.mxu1 }
 0x10d   :  { %v438_v45 = vadd.f32 %v437_v42, %v423_v41  ;;  %287 = vst [vmem:[#allocation7 + $0x28] sm:$0xff] %v238_v43  ;;  %v402_v46 = vadd.f32 %v401_v40, %v238_v43  ;;  %v424_v47 = vmul.f32 %v238_v43, %v238_v43  ;;  %295 = vst [vmem:[#allocation7 + $0x68] sm:$0xff] %v270_v44 }
 0x10e   :  { %653 = shalt.err (!%p650_p0)
}
 0x10f   :  { %s696_s25 = smov 128   ;;  %s697_s26 = smov 8   ;;  %v425_v48 = vmul.f32 %v551_v28, %v551_v28  ;;  %v403_v49 = vadd.f32 %v551_v28, %v402_v46  ;;  %v439_v50 = vadd.f32 %v438_v45, %v424_v47  ;;  %v426_v51 = vmul.f32 %v552_v38, %v552_v38  ;;  %v458_v27 = vld [vmem:[#allocation8] sm:$0x3] }
 0x110   :  { %476 = dma.vmem_to_hbm [thread:$0]  %s471_s1, 2048, %s757_s2, [#allocation4], %s696_s25, %s696_s25, %s697_s26   ;;  %v427_v54 = vmul.f32 %v728_v20, %v728_v20  ;;  %v428_v58 = vmul.f32 %v254_v24, %v254_v24  ;;  %v429_v60 = vmul.f32 %v725_v18, %v725_v18  ;;  %v430_v63 = vmul.f32 %v731_v22, %v731_v22 }
 0x111   :  { %v404_v52 = vadd.f32 %v552_v38, %v403_v49  ;;  %v440_v53 = vadd.f32 %v439_v50, %v425_v48  ;;  %v431_v3 = vmul.f32 %v267_v34, %v267_v34  ;;  %v432_v7 = vmul.f32 %v270_v44, %v270_v44  ;;  %s698_s2 = smov [#allocation8]  }
 0x112   :  { %v433_v8 = vmul.f32 %v734_v29, %v734_v29  ;;  %v434_v11 = vmul.f32 %v560_v39, %v560_v39  ;;  %vm456_vm0 = vcmask 1040384   ;;  %s483_s29 = sshll.u32 %s698_s2, 4  ;;  %s484_s29 = int_to_ptr.vmem [resolvable:$true] %s483_s29 }
 0x113   :  { %v441_v55 = vadd.f32 %v440_v53, %v426_v51  ;;  %v405_v56 = vadd.f32 %v404_v52, %v728_v20  ;;  %s662_s30 = scalar_lea.vmem %s484_s29, 32  ;;  %p667_p2 = scmp.lt.s32.totalorder %s484_s29, %s484_s29 }
 0x114   :  { %p663_p1 = scmp.ne.s32.totalorder %s484_s29, %s662_s30  ;;  %p668_p3 = scmp.lt.s32.totalorder %s662_s30, %s662_s30 }
 0x115   :  { %v406_v57 = vadd.f32 %v405_v56, %v254_v24  ;;  %v442_v59 = vadd.f32 %v441_v55, %v427_v54 }
 0x116   :  { %p669_p4 = por %p668_p3, %p667_p2 }
 0x117   :  { %v407_v61 = vadd.f32 %v725_v18, %v406_v57  ;;  %v443_v62 = vadd.f32 %v442_v59, %v428_v58 }
 0x118   :  { %p670_p5 = pnand %p669_p4, %p663_p1 }
 0x119   :  { %v444_v0 = vadd.f32 %v443_v62, %v429_v60  ;;  %v408_v1 = vadd.f32 %v731_v22, %v407_v61 }
 0x11b   :  { %v409_v2 = vadd.f32 %v408_v1, %v267_v34  ;;  %v445_v4 = vadd.f32 %v444_v0, %v430_v63 }
 0x11d   :  { %v446_v5 = vadd.f32 %v445_v4, %v431_v3  ;;  %v410_v6 = vadd.f32 %v409_v2, %v270_v44 }
 0x11f   :  { %v411_v9 = vadd.f32 %v734_v29, %v410_v6  ;;  %v447_v10 = vadd.f32 %v446_v5, %v432_v7 }
 0x121   :  { %v412_v12 = vadd.f32 %v560_v39, %v411_v9  ;;  %v448_v13 = vadd.f32 %v447_v10, %v433_v8 }
 0x123   :  { %v413_v14 = vrot.slane %v412_v12, 4  ;;  %v449_v15 = vadd.f32 %v448_v13, %v434_v11 }
 0x125   :  { %v414_v16 = vadd.f32 %v413_v14, %v412_v12  ;;  %v450_v17 = vrot.slane %v449_v15, 4 }
 0x127   :  { %v415_v18 = vrot.slane %v414_v16, 2  ;;  %v451_v19 = vadd.f32 %v450_v17, %v449_v15 }
 0x129   :  { %v416_v20 = vadd.f32 %v415_v18, %v414_v16  ;;  %v452_v21 = vrot.slane %v451_v19, 2 }
 0x12b   :  { %v417_v22 = vrot.slane %v416_v20, 1  ;;  %v453_v23 = vadd.f32 %v452_v21, %v451_v19 }
 0x12d   :  { %v454_v24 = vrot.slane %v453_v23, 1  ;;  %v418_v25 = vadd.f32 %v417_v22, %v416_v20 }
 0x12f   :  { %v455_v26 = vadd.f32 %v454_v24, %v453_v23 }
 0x131   :  { %v457_v28 = vsel %vm456_vm0, %v418_v25, %v455_v26 }
 0x132   :  { %v459_v29 = vadd.f32 %v458_v27, %v457_v28 }
 0x134   :  { %460 = vst [vmem:[#allocation8] sm:$0x3] %v459_v29 }
 0x135   :  { %673 = shalt.err (!%p670_p5)
}
 0x136   :  { %486 = dma.vmem_to_hbm [thread:$0]  %s484_s29, 32, %s758_s3, [#allocation9]  }
 0x137   :  { %686 = dma.done.wait [#allocation4], 2048  }
 0x138   :  { %687 = vsyncadd [#allocation4], 4294965248 }
 0x139   :  { %688 = dma.done.wait [#allocation9], 32  }
 0x13a   :  { %689 = vsyncadd [#allocation9], 4294967264 }
 0x13b   :  { %493 = vsyncpa [#allocation3], 1 }
 0x13c   :  { %494 = vsyncpa [#allocation6], 1 }
 0x13d   :  { %495 = vsyncpa [#allocation4], 1 }
 0x13e   :  { %496 = vsyncpa [#allocation9], 1 }

</bundles_post_ra>
